<compile_context>
chip_gen: v6e
topology: v6e:2x2x1
jax: 0.10.0
libtpu: 0.0.40
codegen_flags: <defaults>
</compile_context>

<pallas_src>
import functools

import numpy as np
import jax
import jax.numpy as jnp
from jax.experimental import pallas as pl
from jax.experimental.pallas import tpu as pltpu

NUM_PER_CLS = [9534 * 2, 4284, 420, 380, 2103, 1320, 3573, 1195, 139, 48, 304,
               193, 1001, 190, 534, 1234, 136, 795, 450, 98, 1866, 520, 66, 82,
               418, 1130, 166, 40, 155, 96]
MAX_M = 0.5
S = 30.0


def make_m_list(cls_num_list=NUM_PER_CLS, max_m=MAX_M):
    m_list = 1.0 / np.sqrt(np.sqrt(np.asarray(cls_num_list, dtype=np.float64)))
    m_list = m_list * (max_m / np.max(m_list))
    return jnp.asarray(m_list, dtype=jnp.float32)


def _round_up(x, m):
    return (x + m - 1) // m * m


def _ldam_kernel_t(xt_ref, tgt_ref, sm_ref, out_ref, *, n_total, s):
    """One lane-tile of samples. xt_ref: (C, TN), tgt_ref: (1, TN), sm_ref: (C, 1)."""
    i = pl.program_id(0)
    last = pl.num_programs(0) - 1

    x = xt_ref[...].astype(jnp.float32)        # (C, TN) — all math in f32
    tgt = tgt_ref[...]                         # (1, TN) int32
    sm = sm_ref[...]                           # (C, 1)  f32, already s * m_list
    c, tn = x.shape

    # One-hot (class == target) mask: classes on sublanes, samples on lanes.
    cls = jax.lax.broadcasted_iota(jnp.int32, (c, tn), 0)
    onehot = cls == tgt                        # (C, TN) bool

    # logits = s * (x - where(onehot, m, 0)), with s pre-folded into sm.
    logits = jnp.float32(s) * x - jnp.where(onehot, sm, jnp.float32(0.0))

    # Numerically stable log-softmax cross-entropy per sample (per lane column).
    mx = jnp.max(logits, axis=0, keepdims=True)                        # (1, TN)
    lse = jnp.log(jnp.sum(jnp.exp(logits - mx), axis=0, keepdims=True)) + mx
    tgt_logit = jnp.sum(jnp.where(onehot, logits, jnp.float32(0.0)),
                        axis=0, keepdims=True)                         # (1, TN)
    per_sample = lse - tgt_logit                                       # (1, TN)

    # Full tiles take the unmasked fast path; only the last (possibly ragged)
    # tile pays for the validity iota/compare/select.
    @pl.when(i < last)
    def _():
        out_ref[...] = jnp.broadcast_to(jnp.sum(per_sample), out_ref.shape)

    @pl.when(i == last)
    def _():
        col = i * tn + jax.lax.broadcasted_iota(jnp.int32, (1, tn), 1)
        psum = jnp.sum(jnp.where(col < n_total, per_sample, jnp.float32(0.0)))
        out_ref[...] = jnp.broadcast_to(psum, out_ref.shape)


def ldam_loss_transposed(x_t, target, m_list, s=S, block_cols=4096):
    """x_t: (C, N) logits (f32 or bf16), target: (N,) int labels -> scalar loss."""
    c, n = x_t.shape

    if n < 128:
        tn = n                                  # block dim == full array dim is legal
    else:
        # Lane tile: multiple of 128, and >= 2 grid blocks whenever possible so
        # the "parallel" axis shards across both TensorCores on v7x.
        tn = min(int(block_cols), _round_up(pl.cdiv(n, 2), 128))
        tn = max(128, (tn // 128) * 128)
    num_blocks = pl.cdiv(n, tn)

    tgt2d = target.astype(jnp.int32).reshape(1, n)
    sm_col = (jnp.float32(s) * m_list.astype(jnp.float32)).reshape(c, 1)

    kernel = functools.partial(_ldam_kernel_t, n_total=n, s=float(s))

    partials = pl.pallas_call(
        kernel,
        out_shape=jax.ShapeDtypeStruct((num_blocks, 8, 128), jnp.float32),
        grid=(num_blocks,),
        in_specs=[
            pl.BlockSpec((c, tn), lambda i: (0, i)),   # x transposed (C, N)
            pl.BlockSpec((1, tn), lambda i: (0, i)),   # targets, lane-dense
            pl.BlockSpec((c, 1), lambda i: (0, 0)),    # s * m_list, per class
        ],
        out_specs=pl.BlockSpec((1, 8, 128), lambda i: (i, 0, 0)),
        compiler_params=pltpu.CompilerParams(
            dimension_semantics=("parallel",)),
    )(x_t, tgt2d, sm_col)

    # Final mean over the true batch size (cheap scalar reduce in the wrapper).
    return jnp.sum(partials[:, 0, 0]) / jnp.float32(n)


def ldam_loss(x, target, m_list, s=S, block_cols=4096):
    """Module-equivalent interface: x: (N, C), target: (N,) -> scalar loss.

    # TODO(synk): prefer producing x transposed upstream and calling
    # ldam_loss_transposed directly to avoid this extra HBM read+write.
    """
    return ldam_loss_transposed(jnp.transpose(x), target, m_list,
                                s=s, block_cols=block_cols)


def ldam_loss_ref(x, target, m_list, s=S):
    """Pure-JAX reference mirroring the PyTorch forward (weight=None)."""
    n, c = x.shape
    onehot = jax.nn.one_hot(target, c, dtype=jnp.float32)
    batch_m = (onehot * m_list[None, :]).sum(axis=1, keepdims=True)
    out = jnp.where(onehot.astype(bool), x - batch_m, x)
    logits = s * out
    logp = jax.nn.log_softmax(logits, axis=-1)
    nll = -jnp.take_along_axis(logp, target[:, None], axis=1)[:, 0]
    return jnp.mean(nll)


if __name__ == "__main__":
    key = jax.random.PRNGKey(0)
    kx, kt = jax.random.split(key)

    N, C = 8, len(NUM_PER_CLS)   # batch=8, 30 classes
    x = jax.random.normal(kx, (N, C), dtype=jnp.float32)
    target = jax.random.randint(kt, (N,), 0, C, dtype=jnp.int32)
    m_list = make_m_list()

    loss = ldam_loss(x, target, m_list)
    jax.block_until_ready(loss)
    ref = ldam_loss_ref(x, target, m_list)
    assert jnp.allclose(loss, ref, rtol=1e-5, atol=1e-5), (loss, ref)

    # Gridded / ragged path (N not a multiple of the lane tile, >= 2 blocks).
    N2 = 2100
    x2 = jax.random.normal(kx, (N2, C), dtype=jnp.float32)
    t2 = jax.random.randint(kt, (N2,), 0, C, dtype=jnp.int32)
    loss2 = ldam_loss(x2, t2, m_list, block_cols=1024)
    jax.block_until_ready(loss2)
    ref2 = ldam_loss_ref(x2, t2, m_list)
    assert jnp.allclose(loss2, ref2, rtol=1e-5, atol=1e-5), (loss2, ref2)

    # bf16 activations at the pallas_call boundary (math stays f32 in-kernel).
    x3 = x2.astype(jnp.bfloat16)
    loss3 = ldam_loss(x3, t2, m_list, block_cols=1024)
    jax.block_until_ready(loss3)
    ref3 = ldam_loss_ref(x3.astype(jnp.float32), t2, m_list)
    assert jnp.allclose(loss3, ref3, rtol=1e-4, atol=1e-4), (loss3, ref3)

    print("KERNEL_OK")
</pallas_src>

<mosaic_0001>
module attributes {stable_mosaic.version = 11 : i64} {
  func.func @_ldam_kernel_t(%arg0: i32, %arg1: memref<30x8xf32, #tpu.memory_space<vmem>>, %arg2: memref<1x8xi32, #tpu.memory_space<vmem>>, %arg3: memref<30x1xf32, #tpu.memory_space<vmem>>, %arg4: memref<1x8x128xf32, #tpu.memory_space<vmem>>) attributes {dimension_semantics = [#tpu.dimension_semantics<parallel>], iteration_bounds = array<i64: 1>, scalar_prefetch = 0 : i64, scratch_operands = 0 : i64, tpu.core_type = #tpu.core_type<tc>, window_params = [{transform_indices = @transform_0, window_bounds = array<i64: 30, 8>}, {transform_indices = @transform_1, window_bounds = array<i64: 1, 8>}, {pipeline_mode = #tpu.pipeline_mode<synchronous>, transform_indices = @transform_2, window_bounds = array<i64: 30, 1>}, {transform_indices = @transform_3, window_bounds = array<i64: 1, 8, 128>}]} {
    %c0 = arith.constant 0 : index
    %c0_0 = arith.constant 0 : index
    %0 = vector.load %arg1[%c0, %c0_0] : memref<30x8xf32, #tpu.memory_space<vmem>>, vector<30x8xf32>
    %c0_1 = arith.constant 0 : index
    %c0_2 = arith.constant 0 : index
    %1 = vector.load %arg2[%c0_1, %c0_2] : memref<1x8xi32, #tpu.memory_space<vmem>>, vector<1x8xi32>
    %c0_3 = arith.constant 0 : index
    %c0_4 = arith.constant 0 : index
    %2 = vector.load %arg3[%c0_3, %c0_4] : memref<30x1xf32, #tpu.memory_space<vmem>>, vector<30x1xf32>
    %3 = tpu.iota {dimensions = array<i32: 0>} : vector<30x8xi32>
    %4 = vector.broadcast %1 : vector<1x8xi32> to vector<30x8xi32>
    %5 = arith.cmpi eq, %3, %4 : vector<30x8xi32>
    %cst = arith.constant 3.000000e+01 : f32
    %6 = vector.broadcast %cst : f32 to vector<30x8xf32>
    %7 = arith.mulf %6, %0 : vector<30x8xf32>
    %cst_5 = arith.constant 0.000000e+00 : f32
    %8 = vector.shape_cast %2 : vector<30x1xf32> to vector<30x1xf32>
    %9 = vector.broadcast %8 : vector<30x1xf32> to vector<30x8xf32>
    %10 = vector.broadcast %cst_5 : f32 to vector<30x8xf32>
    %11 = arith.select %5, %9, %10 : vector<30x8xi1>, vector<30x8xf32>
    %12 = arith.subf %7, %11 : vector<30x8xf32>
    %cst_6 = arith.constant dense<0xFF800000> : vector<8xf32>
    %13 = vector.multi_reduction <maximumf>, %12, %cst_6 [0] : vector<30x8xf32> to vector<8xf32>
    %14 = vector.shape_cast %13 : vector<8xf32> to vector<1x8xf32>
    %15 = vector.broadcast %14 : vector<1x8xf32> to vector<30x8xf32>
    %16 = arith.subf %12, %15 : vector<30x8xf32>
    %17 = math.exp %16 : vector<30x8xf32>
    %cst_7 = arith.constant dense<0.000000e+00> : vector<8xf32>
    %18 = vector.multi_reduction <add>, %17, %cst_7 [0] : vector<30x8xf32> to vector<8xf32>
    %19 = vector.shape_cast %18 : vector<8xf32> to vector<1x8xf32>
    %20 = math.log %19 : vector<1x8xf32>
    %21 = arith.addf %20, %14 : vector<1x8xf32>
    %cst_8 = arith.constant 0.000000e+00 : f32
    %22 = vector.broadcast %cst_8 : f32 to vector<30x8xf32>
    %23 = arith.select %5, %12, %22 : vector<30x8xi1>, vector<30x8xf32>
    %cst_9 = arith.constant dense<0.000000e+00> : vector<8xf32>
    %24 = vector.multi_reduction <add>, %23, %cst_9 [0] : vector<30x8xf32> to vector<8xf32>
    %25 = vector.shape_cast %24 : vector<8xf32> to vector<1x8xf32>
    %26 = arith.subf %21, %25 : vector<1x8xf32>
    %c0_i32 = arith.constant 0 : i32
    %27 = arith.cmpi slt, %arg0, %c0_i32 : i32
    %28 = arith.extui %27 : i1 to i32
    %c0_i32_10 = arith.constant 0 : i32
    %29 = arith.cmpi ne, %28, %c0_i32_10 : i32
    scf.if %29 {
      %33 = vector.shape_cast %26 : vector<1x8xf32> to vector<1x1x8xf32>
      %cst_13 = arith.constant dense<0.000000e+00> : vector<1xf32>
      %34 = vector.multi_reduction <add>, %33, %cst_13 [1, 2] : vector<1x1x8xf32> to vector<1xf32>
      %35 = vector.shape_cast %34 : vector<1xf32> to vector<1x1x1xf32>
      %36 = vector.extract %35[0, 0, 0] : f32 from vector<1x1x1xf32>
      %37 = vector.broadcast %36 : f32 to vector<1x8x128xf32>
      %c0_14 = arith.constant 0 : index
      %c0_15 = arith.constant 0 : index
      %c0_16 = arith.constant 0 : index
      %38 = vector.load %arg4[%c0_14, %c0_15, %c0_16] : memref<1x8x128xf32, #tpu.memory_space<vmem>>, vector<1x8x128xf32>
      tpu.vector_store %arg4[%c0_14, %c0_15, %c0_16], %37 {strides = array<i32>} : memref<1x8x128xf32, #tpu.memory_space<vmem>>, vector<1x8x128xf32>,
    } else {
    }
    %c0_i32_11 = arith.constant 0 : i32
    %30 = arith.cmpi eq, %arg0, %c0_i32_11 : i32
    %31 = arith.extui %30 : i1 to i32
    %c0_i32_12 = arith.constant 0 : i32
    %32 = arith.cmpi ne, %31, %c0_i32_12 : i32
    scf.if %32 {
      %c8_i32 = arith.constant 8 : i32
      %33 = arith.muli %arg0, %c8_i32 : i32
      %34 = tpu.iota {dimensions = array<i32: 1>} : vector<1x8xi32>
      %35 = vector.broadcast %33 : i32 to vector<1x8xi32>
      %36 = arith.addi %35, %34 : vector<1x8xi32>
      %c8_i32_13 = arith.constant 8 : i32
      %37 = vector.broadcast %c8_i32_13 : i32 to vector<1x8xi32>
      %38 = arith.cmpi slt, %36, %37 : vector<1x8xi32>
      %cst_14 = arith.constant 0.000000e+00 : f32
      %39 = vector.broadcast %cst_14 : f32 to vector<1x8xf32>
      %40 = arith.select %38, %26, %39 : vector<1x8xi1>, vector<1x8xf32>
      %41 = vector.shape_cast %40 : vector<1x8xf32> to vector<1x1x8xf32>
      %cst_15 = arith.constant dense<0.000000e+00> : vector<1xf32>
      %42 = vector.multi_reduction <add>, %41, %cst_15 [1, 2] : vector<1x1x8xf32> to vector<1xf32>
      %43 = vector.shape_cast %42 : vector<1xf32> to vector<1x1x1xf32>
      %44 = vector.extract %43[0, 0, 0] : f32 from vector<1x1x1xf32>
      %45 = vector.broadcast %44 : f32 to vector<1x8x128xf32>
      %c0_16 = arith.constant 0 : index
      %c0_17 = arith.constant 0 : index
      %c0_18 = arith.constant 0 : index
      %46 = vector.load %arg4[%c0_16, %c0_17, %c0_18] : memref<1x8x128xf32, #tpu.memory_space<vmem>>, vector<1x8x128xf32>
      tpu.vector_store %arg4[%c0_16, %c0_17, %c0_18], %45 {strides = array<i32>} : memref<1x8x128xf32, #tpu.memory_space<vmem>>, vector<1x8x128xf32>,
    } else {
    }
    return
  }
  func.func @transform_0(%arg0: i32) -> (i32, i32) {
    %c0_i32 = arith.constant 0 : i32
    %c0_i32_0 = arith.constant 0 : i32
    return %c0_i32, %arg0 : i32, i32
  }
  func.func @transform_1(%arg0: i32) -> (i32, i32) {
    %c0_i32 = arith.constant 0 : i32
    %c0_i32_0 = arith.constant 0 : i32
    return %c0_i32, %arg0 : i32, i32
  }
  func.func @transform_2(%arg0: i32) -> (i32, i32) {
    %c0_i32 = arith.constant 0 : i32
    %c0_i32_0 = arith.constant 0 : i32
    %c0_i32_1 = arith.constant 0 : i32
    return %c0_i32, %c0_i32_0 : i32, i32
  }
  func.func @transform_3(%arg0: i32) -> (i32, i32, i32) {
    %c0_i32 = arith.constant 0 : i32
    %c0_i32_0 = arith.constant 0 : i32
    %c0_i32_1 = arith.constant 0 : i32
    return %arg0, %c0_i32, %c0_i32_0 : i32, i32, i32
  }
}

</mosaic_0001>

<bundles_post_ra>
// kernel: tpu_custom_call.1
= control target key start
LH: loop header
LB: loop body
LE: loop exit
PB: predicated region body
PF: predicated region fallthrough
CT: control target
= control target key end

     0   :  { %v224_v2 = vmov 0   ;;  %s322_s0 = inlined_call_operand.vmem [shape: f32[30,8], index: 0, kind: input, shape index: {}]   ;;  %s323_s1 = inlined_call_operand.vmem [shape: s32[1,8], index: 1, kind: input, shape index: {}]   ;;  %s324_s2 = inlined_call_operand.vmem [shape: f32[30,1], index: 2, kind: input, shape index: {}]   ;;  %s325_s3 = inlined_call_operand.hbm [shape: f32[1,8,128], index: 3, kind: output, shape index: {}]  }
   0x1   :  { %v22_v0 = vld [vmem:[%s324_s2 + $0x10] sm:$0xff]  ;;  %v20_v1 = vld [vmem:[%s324_s2] sm:$0xff]  ;;  %191 = vset.pattern.permute.xlu1 %v224_v2  ;;  %190 = vset.pattern.permute.xlu0 %v224_v2  ;;  %v23_v3 = vld [vmem:[%s324_s2 + $0x18] sm:$0x3f] }
   0x2   :  { %53 = vperm.xlu1 %191, %v22_v0   ;;  %43 = vperm.xlu0 %190, %v20_v1   ;;  %v21_v4 = vld [vmem:[%s324_s2 + $0x8] sm:$0xff] }
   0x3   :  { %8 = vsyncpa [#allocation3], 0  ;;  %v24_v5 = vlaneseq  ;;  %v264_v8 = vld [vmem:[%s323_s1] ss:$0 sm:$0xff]  ;;  %v17_v9 = vld [vmem:[%s322_s0 + $0x10] sm:$0xff]  ;;  %vm69_vm4 = vcmask 64512  }
   0x4   :  { %v15_v10 = vld [vmem:[%s322_s0] sm:$0xff]  ;;  %v18_v13 = vld [vmem:[%s322_s0 + $0x18] sm:$0x3f]  ;;  %v16_v14 = vld [vmem:[%s322_s0 + $0x8] sm:$0xff]  ;;  %v39_v16 = vmul.f32 30.0, %v17_v9  ;;  %vm73_vm5 = vcmask 62464  }
   0x5   :  { %v25_v6 = vshrl.u32 %v24_v5, 7  ;;  %v37_v18 = vmul.f32 30.0, %v15_v10  ;;  %v40_v21 = vmul.f32 30.0, %v18_v13  ;;  %v38_v22 = vmul.f32 30.0, %v16_v14  ;;  %s225_s0 = smov [#allocation2]  }
   0x6   :  { %58 = vperm.xlu1 %191, %v23_v3   ;;  %48 = vperm.xlu0 %190, %v21_v4   ;;  %vm158_vm7 = vcmask 57344   ;;  %s177_s28 = sshll.u32 %s225_s0, 4  ;;  %s178_s28 = int_to_ptr.vmem [resolvable:$true] %s177_s28 }
   0x7   :  { %v259_v7 = vadd.s32 16, %v25_v6  ;;  %vm33_vm1 = vcmp.eq.s32.totalorder %v25_v6, %v264_v8  ;;  %v275_v11 = vadd.s32 24, %v25_v6  ;;  %v26_v12 = vadd.s32 8, %v25_v6  ;;  %s202_s30 = scalar_lea.vmem %s178_s28, 128  ;;  %p207_p1 = scmp.lt.s32.totalorder %s178_s28, %s178_s28 }
   0x8   :  { %p203_p0 = scmp.ne.s32.totalorder %s178_s28, %s202_s30  ;;  %p208_p2 = scmp.lt.s32.totalorder %s202_s30, %s202_s30 }
   0x9   :  { %vm35_vm0 = vcmp.eq.s32.totalorder %v259_v7, %v264_v8  ;;  %vm36_vm2 = vcmp.eq.s32.totalorder %v275_v11, %v264_v8  ;;  %vm34_vm3 = vcmp.eq.s32.totalorder %v26_v12, %v264_v8  ;;  %v153_v8 = vand.u32 127, %v24_v5 }
   0xa   :  { %p209_p3 = por %p208_p2, %p207_p1 }
   0xb   :  { %vm156_vm6 = vcmp.lt.s32.totalorder %v153_v8, 8 }
   0xc   :  { %p210_p4 = pnand %p209_p3, %p203_p0 }
  0x7d   :  { %v54_v15 = vpop.permute.xlu1 %53  ;;  %v44_v17 = vpop.permute.xlu0 %43 }
  0x7e   :  { %v63_v19 = vsel %vm35_vm0, %v54_v15, 0.0  ;;  %v61_v20 = vsel %vm33_vm1, %v44_v17, 0.0 }
  0x7f   :  { %v67_v23 = vsub.f32 %v39_v16, %v63_v19  ;;  %v65_v24 = vsub.f32 %v37_v18, %v61_v20 }
  0x81   :  { %v59_v25 = vpop.permute.xlu1 %58  ;;  %v49_v26 = vpop.permute.xlu0 %48  ;;  %v72_v31 = vsel %vm69_vm4, %v67_v23, -inf  ;;  %v70_v32 = vsel %vm69_vm4, %v65_v24, -inf  ;;  %v112_v55 = vsel %vm33_vm1, %v65_v24, 0.0  ;;  %v114_v0 = vsel %vm35_vm0, %v67_v23, 0.0 }
  0x82   :  { %v64_v27 = vsel %vm36_vm2, %v59_v25, 0.0  ;;  %v62_v28 = vsel %vm34_vm3, %v49_v26, 0.0  ;;  %v116_v62 = vsel %vm69_vm4, %v112_v55, 0.0  ;;  %v119_v6 = vsel %vm69_vm4, %v114_v0, 0.0 }
  0x83   :  { %v68_v29 = vsub.f32 %v40_v21, %v64_v27  ;;  %v66_v30 = vsub.f32 %v38_v22, %v62_v28 }
  0x85   :  { %v74_v33 = vsel %vm73_vm5, %v68_v29, -inf  ;;  %v71_v34 = vsel %vm69_vm4, %v66_v30, -inf  ;;  %v113_v52 = vsel %vm34_vm3, %v66_v30, 0.0  ;;  %v115_v9 = vsel %vm36_vm2, %v68_v29, 0.0 }
  0x86   :  { %v76_v35 = vmax.f32 %v72_v31, %v74_v33  ;;  %v75_v36 = vmax.f32 %v70_v32, %v71_v34  ;;  %v117_v59 = vsel %vm69_vm4, %v113_v52, 0.0  ;;  %v121_v14 = vsel %vm73_vm5, %v115_v9, 0.0 }
  0x87   :  { %v118_v1 = vadd.f32 %v117_v59, %v116_v62 }
  0x88   :  { %v77_v37 = vmax.f32 %v75_v36, %v76_v35 }
  0x89   :  { %v120_v10 = vadd.f32 %v119_v6, %v118_v1 }
  0x8a   :  { %v78_v38 = vrot.slane %v77_v37, 4 }
  0x8b   :  { %v122_v15 = vadd.f32 %v121_v14, %v120_v10 }
  0x8c   :  { %v79_v39 = vmax.f32 %v77_v37, %v78_v38 }
  0x8d   :  { %v123_v17 = vrot.slane %v122_v15, 4 }
  0x8e   :  { %v80_v40 = vrot.slane %v79_v39, 2 }
  0x8f   :  { %v124_v20 = vadd.f32 %v123_v17, %v122_v15 }
  0x90   :  { %v81_v41 = vmax.f32 %v79_v39, %v80_v40 }
  0x91   :  { %v125_v21 = vrot.slane %v124_v20, 2 }
  0x92   :  { %v82_v42 = vrot.slane %v81_v41, 1 }
  0x93   :  { %v126_v22 = vadd.f32 %v125_v21, %v124_v20 }
  0x94   :  { %v83_v43 = vmax.f32 %v81_v41, %v82_v42 }
  0x96   :  { %v84_v44 = vsub.f32 %v65_v24, %v83_v43  ;;  %v85_v45 = vsub.f32 %v66_v30, %v83_v43  ;;  %v86_v46 = vsub.f32 %v67_v23, %v83_v43  ;;  %v87_v47 = vsub.f32 %v68_v29, %v83_v43 }
  0x97   :  { %v127_v23 = vrot.slane %v126_v22, 1 }
  0x98   :  { %v88_v48 = vmul.f32 1.442695, %v84_v44  ;;  %v90_v49 = vmul.f32 1.442695, %v85_v45  ;;  %v92_v50 = vmul.f32 1.442695, %v86_v46 }
  0x99   :  { %v94_v51 = vmul.f32 1.442695, %v87_v47  ;;  %v128_v26 = vadd.f32 %v127_v23, %v126_v22 }
  0x9a   :  { %192 = vpow2.f32 %v88_v48 }
  0x9b   :  { %194 = vpow2.f32 %v90_v49 }
  0x9c   :  { %196 = vpow2.f32 %v92_v50 }
  0x9d   :  { %198 = vpow2.f32 %v94_v51 }
  0xa7   :  { %v193_v53 = vpop.eup %192 }
  0xa8   :  { %v195_v54 = vpop.eup %194  ;;  %v96_v56 = vsel %vm69_vm4, %v193_v53, 0.0 }
  0xa9   :  { %v197_v57 = vpop.eup %196  ;;  %v97_v58 = vsel %vm69_vm4, %v195_v54, 0.0 }
  0xaa   :  { %v199_v60 = vpop.eup %198  ;;  %v98_v61 = vadd.f32 %v97_v58, %v96_v56  ;;  %v99_v63 = vsel %vm69_vm4, %v197_v57, 0.0 }
  0xab   :  { %v101_v3 = vsel %vm73_vm5, %v199_v60, 0.0 }
  0xac   :  { %v100_v2 = vadd.f32 %v99_v63, %v98_v61 }
  0xae   :  { %v102_v4 = vadd.f32 %v101_v3, %v100_v2 }
  0xb0   :  { %v103_v12 = vrot.slane %v102_v4, 4 }
  0xb2   :  { %v104_v13 = vadd.f32 %v103_v12, %v102_v4 }
  0xb4   :  { %v105_v16 = vrot.slane %v104_v13, 2 }
  0xb6   :  { %v106_v7 = vadd.f32 %v105_v16, %v104_v13 }
  0xb8   :  { %v107_v18 = vrot.slane %v106_v7, 1 }
  0xba   :  { %v108_v19 = vadd.f32 %v107_v18, %v106_v7 }
  0xbc   :  { %200 = vlog2.f32 %v108_v19 }
  0xc9   :  { %v201_v24 = vpop.eup %200 }
  0xca   :  { %v110_v11 = vmul.f32 0.6931472, %v201_v24 }
  0xcc   :  { %v111_v25 = vadd.f32 %v110_v11, %v83_v43 }
  0xce   :  { %v129_v27 = vsub.f32 %v111_v25, %v128_v26 }
  0xd0   :  { %v157_v28 = vsel %vm156_vm6, %v129_v27, 0.0 }
  0xd1   :  { %v159_v29 = vsel %vm158_vm7, %v157_v28, 0.0 }
  0xd2   :  { %160 = vadd.xlane.f32.xlu0 %v159_v29 }
 0x15b   :  { %v161_v30 = vpop.xlane.xlu0 %160 }
 0x15c   :  { %v162_v31 = vrot.slane %v161_v30, 4 }
 0x15e   :  { %v163_v32 = vadd.f32 %v162_v31, %v161_v30 }
 0x160   :  { %v164_v33 = vrot.slane %v163_v32, 2 }
 0x162   :  { %v165_v34 = vadd.f32 %v164_v33, %v163_v32 }
 0x164   :  { %v166_v35 = vrot.slane %v165_v34, 1 }
 0x166   :  { %v167_v36 = vadd.f32 %v166_v35, %v165_v34 }
 0x168   :  { %186 = vpush %v167_v36 }
 0x199   :  { %s187_s29 = spop %186 }
 0x19a   :  { %v169_v5 = vstv %s187_s29 }
 0x19b   :  { %170 = vst [vmem:[#allocation2] sm:$0xff] %v169_v5 }
 0x19c   :  { %213 = shalt.err (!%p210_p4)
}
 0x19d   :  { %180 = dma.vmem_to_hbm [thread:$0]  %s178_s28, 128, %s325_s3, [#allocation3]  }
 0x19e   :  { %222 = dma.done.wait [#allocation3], 128  }
 0x19f   :  { %223 = vsyncadd [#allocation3], 4294967168 }
 0x1a0   :  { %184 = vsyncpa [#allocation3], 1 }

</bundles_post_ra>
